<compile_context>
chip_gen: v7x
topology: tpu7x:2x2x1
jax: 0.10.0
libtpu: 0.0.40
codegen_flags: <defaults>
</compile_context>

<pallas_src>
import functools

import jax
import jax.numpy as jnp
import numpy as np
from jax.experimental import pallas as pl
from jax.experimental.pallas import tpu as pltpu


def _round_up(x, m):
    return (x + m - 1) // m * m


def _vmem_capacity_bytes():
    """Physical VMEM of the local TPU generation; conservative fallback."""
    try:
        info = pltpu.get_tpu_info()
        cap = getattr(info, "vmem_capacity_bytes", None)
        if cap:
            return int(cap)
    except Exception:
        pass
    return 64 * 1024 * 1024  # v7x per-TensorCore VMEM (smallest of v5e/v6e/v7x)


# --------------------------------------------------------------------------
# Kernels
# --------------------------------------------------------------------------
def ffn_resident_kernel(x_ref, w1_ref, b1_ref, w2_ref, b2_ref, o_ref, *,
                        matmul_dtype):
    """One (TM, F) token tile, full weights resident in VMEM."""
    x = x_ref[...]
    if matmul_dtype is not None:
        # In-kernel cast: free VPU op hidden under the matmul (no extra HBM pass).
        x = x.astype(matmul_dtype)
    h = jnp.dot(x, w1_ref[...], preferred_element_type=jnp.float32)
    h = jnp.maximum(h + b1_ref[...], 0.0)          # bias + ReLU in f32 (VPU)
    # dropout: inference mode == identity.
    # TODO(synk): training-mode dropout (pltpu.prng_seed + pltpu.prng_random_bits
    # scaled Bernoulli mask after ReLU and after fc2) not emitted.
    y = jnp.dot(h.astype(w2_ref.dtype), w2_ref[...],
                preferred_element_type=jnp.float32)
    o_ref[...] = (y + b2_ref[...]).astype(o_ref.dtype)


def ffn_hidden_tiled_kernel(x_ref, w1_ref, b1_ref, w2_ref, b2_ref, o_ref,
                            acc_ref, *, matmul_dtype):
    """One (TM, F) token tile x one (TH,) hidden chunk.

    relu chunks exactly over the hidden dim, so
      y = sum_k relu(x @ W1[:, k] + b1[k]) @ W2[k, :]  (+ b2 at the end)
    is accumulated in a (TM, F) f32 scratch across the k grid axis.
    """
    k = pl.program_id(1)

    @pl.when(k == 0)
    def _():
        acc_ref[...] = jnp.zeros_like(acc_ref)

    x = x_ref[...]
    if matmul_dtype is not None:
        x = x.astype(matmul_dtype)
    h = jnp.dot(x, w1_ref[...], preferred_element_type=jnp.float32)
    h = jnp.maximum(h + b1_ref[...], 0.0)
    acc_ref[...] += jnp.dot(h.astype(w2_ref.dtype), w2_ref[...],
                            preferred_element_type=jnp.float32)

    @pl.when(k == pl.num_programs(1) - 1)
    def _():
        o_ref[...] = (acc_ref[...] + b2_ref[...]).astype(o_ref.dtype)


# --------------------------------------------------------------------------
# pallas_call builders
# --------------------------------------------------------------------------
# NOTE: for production shapes, feature_dim / hidden_dim should be multiples of
# 128 (256 preferred on v6e/v7x) for lane-dense unmasked loads/stores and a
# full MXU; the small test shapes compile because block == full array on the
# lane dims.
def _resident_call(n_tokens, F, H, tm, out_dtype, matmul_dtype, vmem_limit,
                   single_buffer_weights, cost):
    kernel = functools.partial(ffn_resident_kernel, matmul_dtype=matmul_dtype)
    # Constant index_map -> never re-fetched; single-buffer to halve footprint.
    res = {"pipeline_mode": pl.Buffered(1)} if single_buffer_weights else {}
    return pl.pallas_call(
        kernel,
        out_shape=jax.ShapeDtypeStruct((n_tokens, F), out_dtype),
        grid=(pl.cdiv(n_tokens, tm),),
        in_specs=[
            pl.BlockSpec((tm, F), lambda i: (i, 0)),            # x: token-tiled
            pl.BlockSpec((F, H), lambda i: (0, 0), **res),      # W1 resident
            pl.BlockSpec((1, H), lambda i: (0, 0), **res),      # b1 resident
            pl.BlockSpec((H, F), lambda i: (0, 0), **res),      # W2 resident
            pl.BlockSpec((1, F), lambda i: (0, 0), **res),      # b2 resident
        ],
        out_specs=pl.BlockSpec((tm, F), lambda i: (i, 0)),
        compiler_params=pltpu.CompilerParams(
            dimension_semantics=("parallel",),   # token tiles independent
            vmem_limit_bytes=vmem_limit),
        cost_estimate=cost,
    )


def _hidden_tiled_call(n_tokens, F, H, tm, th, out_dtype, matmul_dtype,
                       vmem_limit, single_buffer_resident, cost):
    kernel = functools.partial(ffn_hidden_tiled_kernel, matmul_dtype=matmul_dtype)
    res = {"pipeline_mode": pl.Buffered(1)} if single_buffer_resident else {}
    return pl.pallas_call(
        kernel,
        out_shape=jax.ShapeDtypeStruct((n_tokens, F), out_dtype),
        grid=(pl.cdiv(n_tokens, tm), H // th),
        in_specs=[
            pl.BlockSpec((tm, F), lambda i, k: (i, 0)),         # x (constant over k)
            pl.BlockSpec((F, th), lambda i, k: (0, k)),         # W1 chunk (streamed)
            pl.BlockSpec((1, th), lambda i, k: (0, k)),         # b1 chunk
            pl.BlockSpec((th, F), lambda i, k: (k, 0)),         # W2 chunk (streamed)
            pl.BlockSpec((1, F), lambda i, k: (0, 0), **res),   # b2 resident
        ],
        out_specs=pl.BlockSpec((tm, F), lambda i, k: (i, 0)),
        scratch_shapes=[pltpu.VMEM((tm, F), jnp.float32)],      # accumulator
        compiler_params=pltpu.CompilerParams(
            dimension_semantics=("parallel", "arbitrary"),
            vmem_limit_bytes=vmem_limit),
        cost_estimate=cost,
    )


# --------------------------------------------------------------------------
# Wrapper
# --------------------------------------------------------------------------
def feedforward_layer(x, w1, b1, w2, b2, *, matmul_dtype=None,
                      force_hidden_tiling=False, hidden_tile=None):
    """relu(x @ W1 + b1) @ W2 + b2, dropout in eval mode (identity).

    x: (..., F); w1: (F, H); b1: (H,); w2: (H, F); b2: (F,)
    (weights stored transposed vs PyTorch nn.Linear).
    matmul_dtype: optional MXU operand dtype (e.g. jnp.bfloat16); accumulation
    stays f32 and the output keeps x's dtype.  Pass bf16 for the fast MXU path
    on v6e/v7x; default None keeps exact f32 operand semantics.
    """
    F = x.shape[-1]
    H = w1.shape[1]
    lead = x.shape[:-1]
    out_dtype = x.dtype
    n_tokens = 1
    for d in lead:
        n_tokens *= d

    # Weights cast once at rest (halves VMEM residency / HBM traffic for bf16).
    if matmul_dtype is not None:
        w1 = w1.astype(matmul_dtype)
        w2 = w2.astype(matmul_dtype)
    # Activations stay in their native dtype; cast happens in-kernel.
    x2d = x.reshape(n_tokens, F)
    b1_2d = b1.astype(jnp.float32).reshape(1, H)
    b2_2d = b2.astype(jnp.float32).reshape(1, F)

    act_b = jnp.dtype(x.dtype).itemsize
    w_b = jnp.dtype(w1.dtype).itemsize
    out_b = jnp.dtype(out_dtype).itemsize

    cap = _vmem_capacity_bytes()
    budget = int(cap * 0.70)        # ~90 MiB on v5e/v6e, ~45 MiB on v7x
    vmem_limit = int(cap * 0.85)

    # MXU-friendly token tile: as large as fits (cap 512); never shrink below
    # the 256-row MXU (v6e/v7x) just to keep weights resident - tile H instead.
    tm = min(512, _round_up(n_tokens, 8))

    def resident_fp(tm_, bufs):
        weights = bufs * (2 * F * H * w_b + (H + F) * 4)
        acts = 2 * tm_ * F * act_b + 2 * tm_ * F * out_b       # x/out double-buffered
        temps = tm_ * H * 4 + tm_ * H * w_b + tm_ * F * 4      # h f32, h cast, y f32
        return weights + acts + temps

    def tiled_fp(tm_, th_):
        weights = 2 * (2 * F * th_ * w_b + th_ * 4) + F * 4    # streamed chunks + b2
        acts = 2 * tm_ * F * act_b + 2 * tm_ * F * out_b + tm_ * F * 4   # + acc
        temps = tm_ * th_ * 4 + tm_ * th_ * w_b + tm_ * F * 4
        return weights + acts + temps

    use_tiled = bool(force_hidden_tiling)
    th = hidden_tile
    if not use_tiled:
        if resident_fp(tm, 1) <= budget:
            pass                                   # resident path, large TM
        elif tm > 256 and resident_fp(256, 1) <= budget:
            tm = 256                               # MXU-sized floor, still resident
        elif H % 128 == 0:
            use_tiled = True                       # weights too big -> stream over H
        # else: best-effort resident (odd small H); vmem_limit already raised.

    if use_tiled:
        if th is None:
            for cand in (2048, 1024, 512, 256, 128):
                if cand <= H and H % cand == 0 and tiled_fp(tm, cand) <= budget:
                    th = cand
                    break
            if th is None:
                th = 128 if H % 128 == 0 else H
        assert H % th == 0, "hidden_tile must divide hidden_dim"
        while tm > 256 and tiled_fp(tm, th) > budget:
            tm = max(256, (tm // 2) // 8 * 8)

    flops = 4 * n_tokens * F * H                   # two matmuls
    bytes_accessed = (x2d.size * act_b + (w1.size + w2.size) * w_b
                      + (b1.size + b2.size) * 4 + n_tokens * F * out_b)
    cost = pl.CostEstimate(flops=flops, transcendentals=0,
                           bytes_accessed=bytes_accessed)

    def run(single_buffer):
        if use_tiled:
            call = _hidden_tiled_call(n_tokens, F, H, tm, th, out_dtype,
                                      matmul_dtype, vmem_limit, single_buffer,
                                      cost)
        else:
            call = _resident_call(n_tokens, F, H, tm, out_dtype, matmul_dtype,
                                  vmem_limit, single_buffer, cost)
        return call(x2d, w1, b1_2d, w2, b2_2d)

    try:
        out2d = run(True)       # single-buffer resident operands (pl.Buffered(1))
    except Exception:
        out2d = run(False)      # portability fallback: default double-buffering

    return out2d.reshape(*lead, F)


# --------------------------------------------------------------------------
# Params / reference / test
# --------------------------------------------------------------------------
def init_params(key, feature_dim, hidden_dim, dtype=jnp.float32):
    """nn.Linear-style init (uniform +/- 1/sqrt(fan_in)); weights stored (in, out)."""
    k1, k2, k3, k4 = jax.random.split(key, 4)
    bound1 = 1.0 / (feature_dim ** 0.5)
    bound2 = 1.0 / (hidden_dim ** 0.5)
    w1 = jax.random.uniform(k1, (feature_dim, hidden_dim), dtype, -bound1, bound1)
    b1 = jax.random.uniform(k2, (hidden_dim,), dtype, -bound1, bound1)
    w2 = jax.random.uniform(k3, (hidden_dim, feature_dim), dtype, -bound2, bound2)
    b2 = jax.random.uniform(k4, (feature_dim,), dtype, -bound2, bound2)
    return w1, b1, w2, b2


def _ref_ffn(x, w1, b1, w2, b2):
    """Exact f32 host reference (avoids TPU default-matmul-precision ambiguity)."""
    xn = np.asarray(x, np.float32)
    x2 = xn.reshape(-1, xn.shape[-1])
    h = np.maximum(x2 @ np.asarray(w1, np.float32) + np.asarray(b1, np.float32), 0.0)
    y = h @ np.asarray(w2, np.float32) + np.asarray(b2, np.float32)
    return y.reshape(xn.shape[:-1] + (y.shape[-1],))


if __name__ == "__main__":
    key = jax.random.PRNGKey(0)
    kx, kx2, kp, kp2 = jax.random.split(key, 4)

    # --- Test 1: resident-weight path (small shapes) ------------------------
    batch, seq, feature_dim, hidden_dim = 2, 8, 32, 64
    x = jax.random.normal(kx, (batch, seq, feature_dim), jnp.float32)
    w1, b1, w2, b2 = init_params(kp, feature_dim, hidden_dim)
    ref = _ref_ffn(x, w1, b1, w2, b2)

    out = feedforward_layer(x, w1, b1, w2, b2)
    jax.block_until_ready(out)
    assert out.shape == x.shape
    # tolerance covers MXU f32-via-bf16 decomposition on TPU
    assert np.allclose(np.asarray(out), ref, atol=2e-2, rtol=2e-2)

    # bf16 MXU operand path (fast path on v6e/v7x), f32 accumulation
    out_bf16 = feedforward_layer(x, w1, b1, w2, b2, matmul_dtype=jnp.bfloat16)
    jax.block_until_ready(out_bf16)
    assert out_bf16.shape == x.shape
    assert np.allclose(np.asarray(out_bf16), ref, atol=6e-2, rtol=6e-2)

    # --- Test 2: hidden-dim-tiled (streaming-weight) path, forced small -----
    F2, H2 = 128, 256
    x2 = jax.random.normal(kx2, (batch, seq, F2), jnp.float32)
    w1b, b1b, w2b, b2b = init_params(kp2, F2, H2)
    ref2 = _ref_ffn(x2, w1b, b1b, w2b, b2b)

    out2 = feedforward_layer(x2, w1b, b1b, w2b, b2b,
                             force_hidden_tiling=True, hidden_tile=128)
    jax.block_until_ready(out2)
    assert out2.shape == x2.shape
    assert np.allclose(np.asarray(out2), ref2, atol=2e-2, rtol=2e-2)

    print("KERNEL_OK")
</pallas_src>

<mosaic_0001>
module attributes {stable_mosaic.version = 11 : i64} {
  func.func @ffn_resident_kernel(%arg0: i32, %arg1: memref<16x32xf32, #tpu.memory_space<vmem>>, %arg2: memref<32x64xf32, #tpu.memory_space<vmem>>, %arg3: memref<1x64xf32, #tpu.memory_space<vmem>>, %arg4: memref<64x32xf32, #tpu.memory_space<vmem>>, %arg5: memref<1x32xf32, #tpu.memory_space<vmem>>, %arg6: memref<16x32xf32, #tpu.memory_space<vmem>>) attributes {dimension_semantics = [#tpu.dimension_semantics<parallel>], iteration_bounds = array<i64: 1>, scalar_prefetch = 0 : i64, scratch_operands = 0 : i64, tpu.core_type = #tpu.core_type<tc>, window_params = [{transform_indices = @transform_0, window_bounds = array<i64: 16, 32>}, {pipeline_mode = #tpu.pipeline_mode<synchronous>, transform_indices = @transform_1, window_bounds = array<i64: 32, 64>}, {pipeline_mode = #tpu.pipeline_mode<synchronous>, transform_indices = @transform_2, window_bounds = array<i64: 1, 64>}, {pipeline_mode = #tpu.pipeline_mode<synchronous>, transform_indices = @transform_3, window_bounds = array<i64: 64, 32>}, {pipeline_mode = #tpu.pipeline_mode<synchronous>, transform_indices = @transform_4, window_bounds = array<i64: 1, 32>}, {transform_indices = @transform_5, window_bounds = array<i64: 16, 32>}]} {
    %c0 = arith.constant 0 : index
    %c0_0 = arith.constant 0 : index
    %0 = vector.load %arg1[%c0, %c0_0] : memref<16x32xf32, #tpu.memory_space<vmem>>, vector<16x32xf32>
    %c0_1 = arith.constant 0 : index
    %c0_2 = arith.constant 0 : index
    %1 = vector.load %arg2[%c0_1, %c0_2] : memref<32x64xf32, #tpu.memory_space<vmem>>, vector<32x64xf32>
    %cst = arith.constant dense<0.000000e+00> : vector<16x64xf32>
    %2 = tpu.matmul %0, %1, %cst {dimension_numbers = #tpu.dot_dimension_numbers<[1], [0], [0], [1], [0, 0, 1, 1], [], []>} : vector<16x32xf32>, vector<32x64xf32>, vector<16x64xf32> -> vector<16x64xf32>
    %c0_3 = arith.constant 0 : index
    %c0_4 = arith.constant 0 : index
    %3 = vector.load %arg3[%c0_3, %c0_4] : memref<1x64xf32, #tpu.memory_space<vmem>>, vector<1x64xf32>
    %4 = vector.broadcast %3 : vector<1x64xf32> to vector<16x64xf32>
    %5 = arith.addf %2, %4 : vector<16x64xf32>
    %cst_5 = arith.constant 0.000000e+00 : f32
    %6 = vector.broadcast %cst_5 : f32 to vector<16x64xf32>
    %7 = arith.maximumf %5, %6 : vector<16x64xf32>
    %c0_6 = arith.constant 0 : index
    %c0_7 = arith.constant 0 : index
    %8 = vector.load %arg4[%c0_6, %c0_7] : memref<64x32xf32, #tpu.memory_space<vmem>>, vector<64x32xf32>
    %cst_8 = arith.constant dense<0.000000e+00> : vector<16x32xf32>
    %9 = tpu.matmul %7, %8, %cst_8 {dimension_numbers = #tpu.dot_dimension_numbers<[1], [0], [0], [1], [0, 0, 1, 1], [], []>} : vector<16x64xf32>, vector<64x32xf32>, vector<16x32xf32> -> vector<16x32xf32>
    %c0_9 = arith.constant 0 : index
    %c0_10 = arith.constant 0 : index
    %10 = vector.load %arg5[%c0_9, %c0_10] : memref<1x32xf32, #tpu.memory_space<vmem>>, vector<1x32xf32>
    %11 = vector.broadcast %10 : vector<1x32xf32> to vector<16x32xf32>
    %12 = arith.addf %9, %11 : vector<16x32xf32>
    %c0_11 = arith.constant 0 : index
    %c0_12 = arith.constant 0 : index
    %13 = vector.load %arg6[%c0_11, %c0_12] : memref<16x32xf32, #tpu.memory_space<vmem>>, vector<16x32xf32>
    tpu.vector_store %arg6[%c0_11, %c0_12], %12 {strides = array<i32>} : memref<16x32xf32, #tpu.memory_space<vmem>>, vector<16x32xf32>,
    return
  }
  func.func @transform_0(%arg0: i32) -> (i32, i32) {
    %c0_i32 = arith.constant 0 : i32
    %c0_i32_0 = arith.constant 0 : i32
    return %arg0, %c0_i32 : i32, i32
  }
  func.func @transform_1(%arg0: i32) -> (i32, i32) {
    %c0_i32 = arith.constant 0 : i32
    %c0_i32_0 = arith.constant 0 : i32
    %c0_i32_1 = arith.constant 0 : i32
    return %c0_i32, %c0_i32_0 : i32, i32
  }
  func.func @transform_2(%arg0: i32) -> (i32, i32) {
    %c0_i32 = arith.constant 0 : i32
    %c0_i32_0 = arith.constant 0 : i32
    %c0_i32_1 = arith.constant 0 : i32
    return %c0_i32, %c0_i32_0 : i32, i32
  }
  func.func @transform_3(%arg0: i32) -> (i32, i32) {
    %c0_i32 = arith.constant 0 : i32
    %c0_i32_0 = arith.constant 0 : i32
    %c0_i32_1 = arith.constant 0 : i32
    return %c0_i32, %c0_i32_0 : i32, i32
  }
  func.func @transform_4(%arg0: i32) -> (i32, i32) {
    %c0_i32 = arith.constant 0 : i32
    %c0_i32_0 = arith.constant 0 : i32
    %c0_i32_1 = arith.constant 0 : i32
    return %c0_i32, %c0_i32_0 : i32, i32
  }
  func.func @transform_5(%arg0: i32) -> (i32, i32) {
    %c0_i32 = arith.constant 0 : i32
    %c0_i32_0 = arith.constant 0 : i32
    return %arg0, %c0_i32 : i32, i32
  }
}

module attributes {stable_mosaic.version = 11 : i64} {
  func.func @ffn_resident_kernel(%arg0: i32, %arg1: memref<16x32xf32, #tpu.memory_space<vmem>>, %arg2: memref<32x64xf32, #tpu.memory_space<vmem>>, %arg3: memref<1x64xf32, #tpu.memory_space<vmem>>, %arg4: memref<64x32xf32, #tpu.memory_space<vmem>>, %arg5: memref<1x32xf32, #tpu.memory_space<vmem>>, %arg6: memref<16x32xf32, #tpu.memory_space<vmem>>) attributes {dimension_semantics = [#tpu.dimension_semantics<parallel>], iteration_bounds = array<i64: 1>, scalar_prefetch = 0 : i64, scratch_operands = 0 : i64, tpu.core_type = #tpu.core_type<tc>, window_params = [{transform_indices = @transform_0, window_bounds = array<i64: 16, 32>}, {pipeline_mode = #tpu.pipeline_mode<synchronous>, transform_indices = @transform_1, window_bounds = array<i64: 32, 64>}, {pipeline_mode = #tpu.pipeline_mode<synchronous>, transform_indices = @transform_2, window_bounds = array<i64: 1, 64>}, {pipeline_mode = #tpu.pipeline_mode<synchronous>, transform_indices = @transform_3, window_bounds = array<i64: 64, 32>}, {pipeline_mode = #tpu.pipeline_mode<synchronous>, transform_indices = @transform_4, window_bounds = array<i64: 1, 32>}, {transform_indices = @transform_5, window_bounds = array<i64: 16, 32>}]} {
    %c0 = arith.constant 0 : index
    %c0_0 = arith.constant 0 : index
    %0 = vector.load %arg1[%c0, %c0_0] : memref<16x32xf32, #tpu.memory_space<vmem>>, vector<16x32xf32>
    %c0_1 = arith.constant 0 : index
    %c0_2 = arith.constant 0 : index
    %1 = vector.load %arg2[%c0_1, %c0_2] : memref<32x64xf32, #tpu.memory_space<vmem>>, vector<32x64xf32>
    %cst = arith.constant dense<0.000000e+00> : vector<16x64xf32>
    %2 = tpu.matmul %0, %1, %cst {dimension_numbers = #tpu.dot_dimension_numbers<[1], [0], [0], [1], [0, 0, 1, 1], [], []>} : vector<16x32xf32>, vector<32x64xf32>, vector<16x64xf32> -> vector<16x64xf32>
    %c0_3 = arith.constant 0 : index
    %c0_4 = arith.constant 0 : index
    %3 = vector.load %arg3[%c0_3, %c0_4] : memref<1x64xf32, #tpu.memory_space<vmem>>, vector<1x64xf32>
    %4 = vector.broadcast %3 : vector<1x64xf32> to vector<16x64xf32>
    %5 = arith.addf %2, %4 : vector<16x64xf32>
    %cst_5 = arith.constant 0.000000e+00 : f32
    %6 = vector.broadcast %cst_5 : f32 to vector<16x64xf32>
    %7 = arith.maximumf %5, %6 : vector<16x64xf32>
    %c0_6 = arith.constant 0 : index
    %c0_7 = arith.constant 0 : index
    %8 = vector.load %arg4[%c0_6, %c0_7] : memref<64x32xf32, #tpu.memory_space<vmem>>, vector<64x32xf32>
    %cst_8 = arith.constant dense<0.000000e+00> : vector<16x32xf32>
    %9 = tpu.matmul %7, %8, %cst_8 {dimension_numbers = #tpu.dot_dimension_numbers<[1], [0], [0], [1], [0, 0, 1, 1], [], []>} : vector<16x64xf32>, vector<64x32xf32>, vector<16x32xf32> -> vector<16x32xf32>
    %c0_9 = arith.constant 0 : index
    %c0_10 = arith.constant 0 : index
    %10 = vector.load %arg5[%c0_9, %c0_10] : memref<1x32xf32, #tpu.memory_space<vmem>>, vector<1x32xf32>
    %11 = vector.broadcast %10 : vector<1x32xf32> to vector<16x32xf32>
    %12 = arith.addf %9, %11 : vector<16x32xf32>
    %c0_11 = arith.constant 0 : index
    %c0_12 = arith.constant 0 : index
    %13 = vector.load %arg6[%c0_11, %c0_12] : memref<16x32xf32, #tpu.memory_space<vmem>>, vector<16x32xf32>
    tpu.vector_store %arg6[%c0_11, %c0_12], %12 {strides = array<i32>} : memref<16x32xf32, #tpu.memory_space<vmem>>, vector<16x32xf32>,
    return
  }
  func.func @transform_0(%arg0: i32) -> (i32, i32) {
    %c0_i32 = arith.constant 0 : i32
    %c0_i32_0 = arith.constant 0 : i32
    return %arg0, %c0_i32 : i32, i32
  }
  func.func @transform_1(%arg0: i32) -> (i32, i32) {
    %c0_i32 = arith.constant 0 : i32
    %c0_i32_0 = arith.constant 0 : i32
    %c0_i32_1 = arith.constant 0 : i32
    return %c0_i32, %c0_i32_0 : i32, i32
  }
  func.func @transform_2(%arg0: i32) -> (i32, i32) {
    %c0_i32 = arith.constant 0 : i32
    %c0_i32_0 = arith.constant 0 : i32
    %c0_i32_1 = arith.constant 0 : i32
    return %c0_i32, %c0_i32_0 : i32, i32
  }
  func.func @transform_3(%arg0: i32) -> (i32, i32) {
    %c0_i32 = arith.constant 0 : i32
    %c0_i32_0 = arith.constant 0 : i32
    %c0_i32_1 = arith.constant 0 : i32
    return %c0_i32, %c0_i32_0 : i32, i32
  }
  func.func @transform_4(%arg0: i32) -> (i32, i32) {
    %c0_i32 = arith.constant 0 : i32
    %c0_i32_0 = arith.constant 0 : i32
    %c0_i32_1 = arith.constant 0 : i32
    return %c0_i32, %c0_i32_0 : i32, i32
  }
  func.func @transform_5(%arg0: i32) -> (i32, i32) {
    %c0_i32 = arith.constant 0 : i32
    %c0_i32_0 = arith.constant 0 : i32
    return %arg0, %c0_i32 : i32, i32
  }
}

</mosaic_0001>

<bundles_post_ra>
// kernel: tpu_custom_call.1
= control target key start
LH: loop header
LB: loop body
LE: loop exit
PB: predicated region body
PF: predicated region fallthrough
CT: control target
= control target key end

     0   :  { %vm34_vm0 = vcmask 261120   ;;  %s433_s0 = inlined_call_operand.vmem [shape: f32[16,32], index: 0, kind: input, shape index: {}]   ;;  %s434_s1 = inlined_call_operand.vmem [shape: f32[32,64], index: 1, kind: input, shape index: {}]   ;;  %s435_s2 = inlined_call_operand.vmem [shape: f32[1,64], index: 2, kind: input, shape index: {}]   ;;  %s436_s3 = inlined_call_operand.vmem [shape: f32[64,32], index: 3, kind: input, shape index: {}]   ;;  %s437_s4 = inlined_call_operand.vmem [shape: f32[1,32], index: 4, kind: input, shape index: {}]   ;;  %s438_s5 = inlined_call_operand.hbm [shape: f32[16,32], index: 5, kind: output, shape index: {}]  }
   0x1   :  { %v23_v0 = vld [vmem:[%s434_s1] sm:$0xff]  ;;  %v24_v1 = vld [vmem:[%s434_s1 + $0x8] sm:$0xff]  ;;  %v25_v2 = vld [vmem:[%s434_s1 + $0x10] sm:$0xff] }
   0x2   :  { %v285_v3 = vpack.c.bf16 %v24_v1, %v23_v0  ;;  %v26_v4 = vld [vmem:[%s434_s1 + $0x18] sm:$0xff]  ;;  %v21_v5 = vld [vmem:[%s433_s0] sm:$0xff]  ;;  %v119_v8 = vld [vmem:[%s436_s3 + $0x8] sm:$0xff] }
   0x3   :  { %v289_v6 = vpack.c.bf16 %v26_v4, %v25_v2  ;;  %263 = vmatprep.mubr.msk.f32.mxu0 %vm34_vm0, %v21_v5  ;;  %v118_v7 = vld [vmem:[%s436_s3] sm:$0xff]  ;;  %v120_v9 = vld [vmem:[%s436_s3 + $0x10] sm:$0xff]  ;;  %v121_v11 = vld [vmem:[%s436_s3 + $0x18] sm:$0xff] }
   0x4   :  { %286 = vmatprep.subr.bf16.mxu0 %v285_v3  ;;  %v293_v10 = vpack.c.bf16 %v119_v8, %v118_v7  ;;  %v297_v12 = vpack.c.bf16 %v121_v11, %v120_v9  ;;  %v122_v13 = vld [vmem:[%s436_s3 + $0x20] sm:$0xff]  ;;  %v123_v14 = vld [vmem:[%s436_s3 + $0x28] sm:$0xff] }
   0x5   :  { %288 = vmatpush3.bf16.msra.mxu0 %v285_v3 }
   0x6   :  { %10 = vsyncpa [#allocation3], 0  ;;  %290 = vmatprep.subr.bf16.mxu0 %v289_v6  ;;  %294 = vmatprep.subr.bf16.mxu1 %v293_v10  ;;  %v301_v15 = vpack.c.bf16 %v123_v14, %v122_v13  ;;  %v22_v16 = vld [vmem:[%s433_s0 + $0x8] sm:$0xff]  ;;  %v124_v17 = vld [vmem:[%s436_s3 + $0x30] sm:$0xff]  ;;  %vm133_vm1 = vcmask 523264  }
   0x7   :  { %296 = vmatpush3.bf16.msra.mxu1 %v293_v10  ;;  %v125_v18 = vld [vmem:[%s436_s3 + $0x38] sm:$0xff]  ;;  %v233_v20 = vld [vmem:[%s435_s2] ss:$0 sm:$0xff]  ;;  %s336_s3 = smov [#allocation2]  }
   0x8   :  { %298 = vmatprep.subr.bf16.mxu1 %v297_v12  ;;  %v305_v19 = vpack.c.bf16 %v125_v18, %v124_v17  ;;  %v236_v27 = vld [vmem:[%s437_s4] ss:$0 sm:$0xff]  ;;  %s222_s23 = sshll.u32 %s336_s3, 4  ;;  %s223_s23 = int_to_ptr.vmem [resolvable:$true] %s222_s23 }
   0x9   :  { %292 = vmatpush3.bf16.msra.mxu0 %v289_v6  ;;  %s312_s2 = scalar_lea.vmem %s223_s23, 256  ;;  %p317_p1 = scmp.lt.s32.totalorder %s223_s23, %s223_s23 }
   0xa   :  { %p313_p0 = scmp.ne.s32.totalorder %s223_s23, %s312_s2  ;;  %p318_p2 = scmp.lt.s32.totalorder %s312_s2, %s312_s2 }
   0xb   :  { %300 = vmatpush3.bf16.msra.mxu1 %v297_v12 }
   0xc   :  { %264 = vmatmul.mubr.msk.f32.vlgmr.msra.gmra.mrb[0].mxu0 %vm34_vm0, %v22_v16  ;;  %302 = vmatprep.subr.bf16.mxu1 %v301_v15  ;;  %p319_p3 = por %p318_p2, %p317_p1 }
   0xe   :  { %p320_p4 = pnand %p319_p3, %p313_p0 }
   0xf   :  { %304 = vmatpush3.bf16.msra.mxu1 %v301_v15 }
  0x10   :  { %306 = vmatprep.subr.bf16.mxu1 %v305_v19 }
  0x13   :  { %308 = vmatpush3.bf16.msra.mxu1 %v305_v19 }
  0xdf   :  { %v265_v21 = vpop.f32.mrb[0].mxu0 }
  0xe0   :  { %v113_v22 = vadd.f32 %v265_v21, %v233_v20  ;;  %v107_v23 = vpop.f32.mrb[1].mxu0 }
  0xe1   :  { %v108_v24 = vadd.f32 %v233_v20, %v107_v23 }
  0xe2   :  { %v117_v26 = vmax.f32 %v113_v22, 0.0 }
  0xe3   :  { %v116_v25 = vmax.f32 %v108_v24, 0.0 }
  0xe5   :  { %282 = vmatprep.mubr.msk.f32.mxu1 %vm133_vm1, %v116_v25 }
  0xe6   :  { %283 = vmatmul.mubr.msk.f32.vlgmr.msra.gmra.mrb[0].mxu1 %vm133_vm1, %v117_v26 }
 0x1b9   :  { %v284_v28 = vpop.f32.mrb[0].mxu1 }
 0x1ba   :  { %v212_v29 = vadd.f32 %v284_v28, %v236_v27  ;;  %v206_v30 = vpop.f32.mrb[1].mxu1 }
 0x1bb   :  { %v207_v31 = vadd.f32 %v236_v27, %v206_v30 }
 0x1bc   :  { %216 = vst.msk [vmem:[#allocation2 + $0x8] sm:$0xff] %vm34_vm0, %v212_v29 }
 0x1bd   :  { %215 = vst.msk [vmem:[#allocation2] sm:$0xff] %vm34_vm0, %v207_v31 }
 0x1be   :  { %323 = shalt.err (!%p320_p4)
}
 0x1bf   :  { %s324_s25 = scalar_lea.hbm %s438_s5, 256 }
 0x1c0   :  { %p325_p5 = scmp.ne.s32.totalorder %s438_s5, %s324_s25  ;;  %p328_p6 = scmp.lt.u32.totalorder %s324_s25, %s438_s5 }
 0x1c2   :  { %p330_p7 = pnand %p328_p6, %p325_p5 }
 0x1c4   :  { %333 = shalt.err (!%p330_p7)
}
 0x1c5   :  { %s337_s30 = smov 128   ;;  %s338_s6 = smov 8  }
 0x1c6   :  { %228 = dma.vmem_to_hbm [thread:$0]  %s223_s23, 256, %s438_s5, [#allocation3], %s337_s30, %s337_s30, %s338_s6  }
 0x1c7   :  { %334 = dma.done.wait [#allocation3], 256  }
 0x1c8   :  { %335 = vsyncadd [#allocation3], 4294967040 }
 0x1c9   :  { %232 = vsyncpa [#allocation3], 1 }

// kernel: tpu_custom_call.1
= control target key start
LH: loop header
LB: loop body
LE: loop exit
PB: predicated region body
PF: predicated region fallthrough
CT: control target
= control target key end

     0   :  { %vm34_vm0 = vcmask 261120   ;;  %s433_s0 = inlined_call_operand.vmem [shape: f32[16,32], index: 0, kind: input, shape index: {}]   ;;  %s434_s1 = inlined_call_operand.vmem [shape: f32[32,64], index: 1, kind: input, shape index: {}]   ;;  %s435_s2 = inlined_call_operand.vmem [shape: f32[1,64], index: 2, kind: input, shape index: {}]   ;;  %s436_s3 = inlined_call_operand.vmem [shape: f32[64,32], index: 3, kind: input, shape index: {}]   ;;  %s437_s4 = inlined_call_operand.vmem [shape: f32[1,32], index: 4, kind: input, shape index: {}]   ;;  %s438_s5 = inlined_call_operand.hbm [shape: f32[16,32], index: 5, kind: output, shape index: {}]  }
   0x1   :  { %v23_v0 = vld [vmem:[%s434_s1] sm:$0xff]  ;;  %v24_v1 = vld [vmem:[%s434_s1 + $0x8] sm:$0xff]  ;;  %v25_v2 = vld [vmem:[%s434_s1 + $0x10] sm:$0xff] }
   0x2   :  { %v285_v3 = vpack.c.bf16 %v24_v1, %v23_v0  ;;  %v26_v4 = vld [vmem:[%s434_s1 + $0x18] sm:$0xff]  ;;  %v21_v5 = vld [vmem:[%s433_s0] sm:$0xff]  ;;  %v119_v8 = vld [vmem:[%s436_s3 + $0x8] sm:$0xff] }
   0x3   :  { %v289_v6 = vpack.c.bf16 %v26_v4, %v25_v2  ;;  %263 = vmatprep.mubr.msk.f32.mxu0 %vm34_vm0, %v21_v5  ;;  %v118_v7 = vld [vmem:[%s436_s3] sm:$0xff]  ;;  %v120_v9 = vld [vmem:[%s436_s3 + $0x10] sm:$0xff]  ;;  %v121_v11 = vld [vmem:[%s436_s3 + $0x18] sm:$0xff] }
   0x4   :  { %286 = vmatprep.subr.bf16.mxu0 %v285_v3  ;;  %v293_v10 = vpack.c.bf16 %v119_v8, %v118_v7  ;;  %v297_v12 = vpack.c.bf16 %v121_v11, %v120_v9  ;;  %v122_v13 = vld [vmem:[%s436_s3 + $0x20] sm:$0xff]  ;;  %v123_v14 = vld [vmem:[%s436_s3 + $0x28] sm:$0xff] }
   0x5   :  { %288 = vmatpush3.bf16.msra.mxu0 %v285_v3 }
   0x6   :  { %10 = vsyncpa [#allocation3], 0  ;;  %290 = vmatprep.subr.bf16.mxu0 %v289_v6  ;;  %294 = vmatprep.subr.bf16.mxu1 %v293_v10  ;;  %v301_v15 = vpack.c.bf16 %v123_v14, %v122_v13  ;;  %v22_v16 = vld [vmem:[%s433_s0 + $0x8] sm:$0xff]  ;;  %v124_v17 = vld [vmem:[%s436_s3 + $0x30] sm:$0xff]  ;;  %vm133_vm1 = vcmask 523264  }
   0x7   :  { %296 = vmatpush3.bf16.msra.mxu1 %v293_v10  ;;  %v125_v18 = vld [vmem:[%s436_s3 + $0x38] sm:$0xff]  ;;  %v233_v20 = vld [vmem:[%s435_s2] ss:$0 sm:$0xff]  ;;  %s336_s3 = smov [#allocation2]  }
   0x8   :  { %298 = vmatprep.subr.bf16.mxu1 %v297_v12  ;;  %v305_v19 = vpack.c.bf16 %v125_v18, %v124_v17  ;;  %v236_v27 = vld [vmem:[%s437_s4] ss:$0 sm:$0xff]  ;;  %s222_s23 = sshll.u32 %s336_s3, 4  ;;  %s223_s23 = int_to_ptr.vmem [resolvable:$true] %s222_s23 }
   0x9   :  { %292 = vmatpush3.bf16.msra.mxu0 %v289_v6  ;;  %s312_s2 = scalar_lea.vmem %s223_s23, 256  ;;  %p317_p1 = scmp.lt.s32.totalorder %s223_s23, %s223_s23 }
   0xa   :  { %p313_p0 = scmp.ne.s32.totalorder %s223_s23, %s312_s2  ;;  %p318_p2 = scmp.lt.s32.totalorder %s312_s2, %s312_s2 }
   0xb   :  { %300 = vmatpush3.bf16.msra.mxu1 %v297_v12 }
   0xc   :  { %264 = vmatmul.mubr.msk.f32.vlgmr.msra.gmra.mrb[0].mxu0 %vm34_vm0, %v22_v16  ;;  %302 = vmatprep.subr.bf16.mxu1 %v301_v15  ;;  %p319_p3 = por %p318_p2, %p317_p1 }
   0xe   :  { %p320_p4 = pnand %p319_p3, %p313_p0 }
   0xf   :  { %304 = vmatpush3.bf16.msra.mxu1 %v301_v15 }
  0x10   :  { %306 = vmatprep.subr.bf16.mxu1 %v305_v19 }
  0x13   :  { %308 = vmatpush3.bf16.msra.mxu1 %v305_v19 }
  0xdf   :  { %v265_v21 = vpop.f32.mrb[0].mxu0 }
  0xe0   :  { %v113_v22 = vadd.f32 %v265_v21, %v233_v20  ;;  %v107_v23 = vpop.f32.mrb[1].mxu0 }
  0xe1   :  { %v108_v24 = vadd.f32 %v233_v20, %v107_v23 }
  0xe2   :  { %v117_v26 = vmax.f32 %v113_v22, 0.0 }
  0xe3   :  { %v116_v25 = vmax.f32 %v108_v24, 0.0 }
  0xe5   :  { %282 = vmatprep.mubr.msk.f32.mxu1 %vm133_vm1, %v116_v25 }
  0xe6   :  { %283 = vmatmul.mubr.msk.f32.vlgmr.msra.gmra.mrb[0].mxu1 %vm133_vm1, %v117_v26 }
 0x1b9   :  { %v284_v28 = vpop.f32.mrb[0].mxu1 }
 0x1ba   :  { %v212_v29 = vadd.f32 %v284_v28, %v236_v27  ;;  %v206_v30 = vpop.f32.mrb[1].mxu1 }
 0x1bb   :  { %v207_v31 = vadd.f32 %v236_v27, %v206_v30 }
 0x1bc   :  { %216 = vst.msk [vmem:[#allocation2 + $0x8] sm:$0xff] %vm34_vm0, %v212_v29 }
 0x1bd   :  { %215 = vst.msk [vmem:[#allocation2] sm:$0xff] %vm34_vm0, %v207_v31 }
 0x1be   :  { %323 = shalt.err (!%p320_p4)
}
 0x1bf   :  { %s324_s25 = scalar_lea.hbm %s438_s5, 256 }
 0x1c0   :  { %p325_p5 = scmp.ne.s32.totalorder %s438_s5, %s324_s25  ;;  %p328_p6 = scmp.lt.u32.totalorder %s324_s25, %s438_s5 }
 0x1c2   :  { %p330_p7 = pnand %p328_p6, %p325_p5 }
 0x1c4   :  { %333 = shalt.err (!%p330_p7)
}
 0x1c5   :  { %s337_s30 = smov 128   ;;  %s338_s6 = smov 8  }
 0x1c6   :  { %228 = dma.vmem_to_hbm [thread:$0]  %s223_s23, 256, %s438_s5, [#allocation3], %s337_s30, %s337_s30, %s338_s6  }
 0x1c7   :  { %334 = dma.done.wait [#allocation3], 256  }
 0x1c8   :  { %335 = vsyncadd [#allocation3], 4294967040 }
 0x1c9   :  { %232 = vsyncpa [#allocation3], 1 }

</bundles_post_ra>
